<compile_context>
chip_gen: v7x
topology: tpu7x:2x2x1
jax: 0.10.0
libtpu: 0.0.40
codegen_flags: <defaults>
</compile_context>

<pallas_src>
import functools

import jax
import jax.numpy as jnp
from jax import lax
from jax.experimental import pallas as pl
from jax.experimental.pallas import tpu as pltpu


# ---------------------------------------------------------------------------
# helpers
# ---------------------------------------------------------------------------
def _lrelu(v):
    # LeakyReLU(0.1): max(v, 0.1*v) is exact for slope in (0, 1)
    return jnp.maximum(v, 0.1 * v)


def _pick_tn(m):
    # Split the lane axis into >=2 tiles (keeps both v7x TensorCores busy) with
    # a 128-multiple lane width; otherwise fall back to the full axis.
    for tn in (2048, 1024, 512, 256, 128):
        if m % tn == 0 and m // tn >= 2:
            return tn
    return m


# ---------------------------------------------------------------------------
# kernels (channels-first: every activation block is [C, TN], TN lane-dense)
# ---------------------------------------------------------------------------
def _stem_kernel(x_ref, w_cv2_ref, b_cv2_ref, w_cv1_ref, b_cv1_ref,
                 w_b1_ref, b_b1_ref, a2_ref, t_ref, u_ref):
    x = x_ref[...].astype(jnp.float32)                              # [c1, TN]
    y2 = jnp.dot(w_cv2_ref[...], x,
                 preferred_element_type=jnp.float32) + b_cv2_ref[...]
    a2_ref[...] = _lrelu(y2).astype(a2_ref.dtype)
    y1 = jnp.dot(w_cv1_ref[...], x,
                 preferred_element_type=jnp.float32) + b_cv1_ref[...]
    t = _lrelu(y1)
    t_ref[...] = t.astype(t_ref.dtype)
    u = jnp.dot(w_b1_ref[...], t,
                preferred_element_type=jnp.float32) + b_b1_ref[...]
    u_ref[...] = _lrelu(u).astype(u_ref.dtype)


def _mid_kernel(t_ref, u9_ref, w3_ref, b3_ref, wn_ref, bn_ref,
                t_out_ref, u_out_ref, *, add):
    # 3x3 conv (as one matmul over the 9-tap im2col stack) + BN + act, shortcut
    # add, then the next Bottleneck's 1x1 conv + BN + act.
    v = jnp.dot(w3_ref[...], u9_ref[...].astype(jnp.float32),
                preferred_element_type=jnp.float32) + b3_ref[...]
    v = _lrelu(v)
    t = (t_ref[...].astype(jnp.float32) + v) if add else v
    t_out_ref[...] = t.astype(t_out_ref.dtype)
    u = jnp.dot(wn_ref[...], t,
                preferred_element_type=jnp.float32) + bn_ref[...]
    u_out_ref[...] = _lrelu(u).astype(u_out_ref.dtype)


def _out_kernel(t_ref, u9_ref, a2_ref, w3_ref, b3_ref, wc3_ref, bc3_ref,
                w4a_ref, w4b_ref, b4_ref, o_ref, *, add):
    # Last Bottleneck's 3x3 conv + shortcut, then cv3 (+folded cat-BN+act),
    # then cv4 on the (implicit) concat, its BN + LeakyReLU.
    v = jnp.dot(w3_ref[...], u9_ref[...].astype(jnp.float32),
                preferred_element_type=jnp.float32) + b3_ref[...]
    v = _lrelu(v)
    t = (t_ref[...].astype(jnp.float32) + v) if add else v
    a1 = jnp.dot(wc3_ref[...], t,
                 preferred_element_type=jnp.float32) + bc3_ref[...]
    a1 = _lrelu(a1)
    pre = (jnp.dot(w4a_ref[...], a1, preferred_element_type=jnp.float32)
           + jnp.dot(w4b_ref[...], a2_ref[...].astype(jnp.float32),
                     preferred_element_type=jnp.float32)
           + b4_ref[...])
    o_ref[...] = _lrelu(pre).astype(o_ref.dtype)


# ---------------------------------------------------------------------------
# pallas_call wrappers
# ---------------------------------------------------------------------------
def _col_spec(c, tn):
    return pl.BlockSpec((c, tn), lambda i: (0, i))


def _full_spec(a):
    return pl.BlockSpec(a.shape, lambda i: (0, 0))


_CPARAMS = pltpu.CompilerParams(dimension_semantics=("parallel",))


def _csp_stem(x, p, blk0, tn):
    c1, m = x.shape
    c_ = p["w_cv1"].shape[0]
    return pl.pallas_call(
        _stem_kernel,
        out_shape=tuple(jax.ShapeDtypeStruct((c_, m), x.dtype) for _ in range(3)),
        grid=(m // tn,),
        in_specs=[_col_spec(c1, tn),
                  _full_spec(p["w_cv2"]), _full_spec(p["b_cv2"]),
                  _full_spec(p["w_cv1"]), _full_spec(p["b_cv1"]),
                  _full_spec(blk0["w1"]), _full_spec(blk0["b1"])],
        out_specs=(_col_spec(c_, tn), _col_spec(c_, tn), _col_spec(c_, tn)),
        compiler_params=_CPARAMS,
    )(x, p["w_cv2"], p["b_cv2"], p["w_cv1"], p["b_cv1"], blk0["w1"], blk0["b1"])


def _csp_mid(t, u9, blk, nxt, tn, add):
    c_, m = t.shape
    return pl.pallas_call(
        functools.partial(_mid_kernel, add=add),
        out_shape=tuple(jax.ShapeDtypeStruct((c_, m), t.dtype) for _ in range(2)),
        grid=(m // tn,),
        in_specs=[_col_spec(c_, tn), _col_spec(9 * c_, tn),
                  _full_spec(blk["w3_flat"]), _full_spec(blk["b3"]),
                  _full_spec(nxt["w1"]), _full_spec(nxt["b1"])],
        out_specs=(_col_spec(c_, tn), _col_spec(c_, tn)),
        compiler_params=_CPARAMS,
    )(t, u9, blk["w3_flat"], blk["b3"], nxt["w1"], nxt["b1"])


def _csp_out(t, u9, a2, blk, p, tn, add):
    c_, m = t.shape
    c2 = p["w_cv4a"].shape[0]
    return pl.pallas_call(
        functools.partial(_out_kernel, add=add),
        out_shape=jax.ShapeDtypeStruct((c2, m), t.dtype),
        grid=(m // tn,),
        in_specs=[_col_spec(c_, tn), _col_spec(9 * c_, tn), _col_spec(c_, tn),
                  _full_spec(blk["w3_flat"]), _full_spec(blk["b3"]),
                  _full_spec(p["w_cv3"]), _full_spec(p["b_cv3"]),
                  _full_spec(p["w_cv4a"]), _full_spec(p["w_cv4b"]),
                  _full_spec(p["b_cv4"])],
        out_specs=_col_spec(c2, tn),
        compiler_params=_CPARAMS,
    )(t, u9, a2, blk["w3_flat"], blk["b3"], p["w_cv3"], p["b_cv3"],
      p["w_cv4a"], p["w_cv4b"], p["b_cv4"])


def _shifted_taps(u, B, H, W):
    # Build the im2col tap stack for a 3x3/stride-1/"SAME" conv:
    # u: [c, B*H*W] -> [9*c, B*H*W] with rows (kh*3+kw)*c + ci holding
    # u[ci] sampled at spatial offset (kh-1, kw-1), zero-padded.
    c, m = u.shape
    us = u.reshape(c, B, H, W)
    up = jnp.pad(us, ((0, 0), (0, 0), (1, 1), (1, 1)))
    taps = [up[:, :, kh:kh + H, kw:kw + W].reshape(c, m)
            for kh in range(3) for kw in range(3)]
    return jnp.concatenate(taps, axis=0)


# ---------------------------------------------------------------------------
# forward
# ---------------------------------------------------------------------------
def bottleneck_csp_forward(x_nchw, p, *, shortcut=True):
    B, c1, H, W = x_nchw.shape
    m = B * H * W
    tn = _pick_tn(m)
    x = x_nchw.transpose(1, 0, 2, 3).reshape(c1, m)     # channels-first flat

    blocks = p["blocks"]
    assert len(blocks) >= 1
    a2, t, u = _csp_stem(x, p, blocks[0], tn)

    n = len(blocks)
    out = None
    for j, blk in enumerate(blocks):
        u9 = _shifted_taps(u, B, H, W)
        if j < n - 1:
            t, u = _csp_mid(t, u9, blk, blocks[j + 1], tn, shortcut)
        else:
            out = _csp_out(t, u9, a2, blk, p, tn, shortcut)

    c2 = p["w_cv4a"].shape[0]
    return out.reshape(c2, B, H, W).transpose(1, 0, 2, 3)


# ---------------------------------------------------------------------------
# deterministic synthetic parameters (inference-mode BN folded into weights)
# ---------------------------------------------------------------------------
def _bn_fold(key, c):
    k1, k2, k3, k4 = jax.random.split(key, 4)
    gamma = 1.0 + 0.1 * jax.random.normal(k1, (c,), jnp.float32)
    beta = 0.1 * jax.random.normal(k2, (c,), jnp.float32)
    mean = 0.1 * jax.random.normal(k3, (c,), jnp.float32)
    var = 1.0 + 0.1 * jnp.abs(jax.random.normal(k4, (c,), jnp.float32))
    scale = gamma / jnp.sqrt(var + 1e-5)
    shift = beta - mean * scale
    return scale, shift


def init_csp_params(key, c1, c2, n=1, e=0.5):
    c_ = int(c2 * e)
    keys = jax.random.split(key, 7 + n)

    def w(k, shape, s=0.1):
        return s * jax.random.normal(k, shape, jnp.float32)

    p = {}
    # cv1 = Conv(c1, c_, 1): conv (no bias) + BN + LeakyReLU  -> fold BN
    s, t = _bn_fold(keys[1], c_)
    p["w_cv1"] = w(keys[0], (c_, c1)) * s[:, None]
    p["b_cv1"] = t[:, None]

    # standalone self.bn over cat(y1, y2) (2*c_ channels): fold per-branch
    s_cat, t_cat = _bn_fold(keys[2], 2 * c_)
    # cv2 = plain Conv2d(c1, c_, 1) -> fold the second half of the cat-BN
    p["w_cv2"] = w(keys[3], (c_, c1)) * s_cat[c_:, None]
    p["b_cv2"] = t_cat[c_:, None]
    # cv3 = plain Conv2d(c_, c_, 1) -> fold the first half of the cat-BN
    p["w_cv3"] = w(keys[4], (c_, c_)) * s_cat[:c_, None]
    p["b_cv3"] = t_cat[:c_, None]

    # cv4 = Conv(2c_, c2, 1): conv + BN + LeakyReLU -> fold BN, split on concat
    s4, t4 = _bn_fold(keys[6], c2)
    w_cv4 = w(keys[5], (c2, 2 * c_)) * s4[:, None]
    p["w_cv4a"] = w_cv4[:, :c_]
    p["w_cv4b"] = w_cv4[:, c_:]
    p["b_cv4"] = t4[:, None]

    # Bottleneck(c_, c_, shortcut, g=1, e=1.0) x n
    blocks = []
    for j in range(n):
        kj = jax.random.split(keys[7 + j], 4)
        s1, t1 = _bn_fold(kj[1], c_)
        wb1 = w(kj[0], (c_, c_)) * s1[:, None]
        s2, t2 = _bn_fold(kj[3], c_)
        wb2 = w(kj[2], (c_, c_, 3, 3)) * s2[:, None, None, None]   # OIHW, BN folded
        blocks.append({
            "w1": wb1, "b1": t1[:, None],
            "w3_conv": wb2,                                         # for the reference
            "w3_flat": wb2.transpose(0, 2, 3, 1).reshape(c_, 9 * c_),
            "b3": t2[:, None],
        })
    p["blocks"] = blocks
    return p


# ---------------------------------------------------------------------------
# pure-JAX reference (independent check of layout / im2col / folding)
# ---------------------------------------------------------------------------
def reference_forward(x_nchw, p, shortcut=True):
    B, c1, H, W = x_nchw.shape
    m = B * H * W
    c_ = p["w_cv1"].shape[0]
    x = x_nchw.transpose(1, 0, 2, 3).reshape(c1, m)
    a2 = _lrelu(p["w_cv2"] @ x + p["b_cv2"])
    t = _lrelu(p["w_cv1"] @ x + p["b_cv1"])
    for blk in p["blocks"]:
        u = _lrelu(blk["w1"] @ t + blk["b1"])
        us = u.reshape(c_, B, H, W).transpose(1, 0, 2, 3)
        v = lax.conv_general_dilated(us, blk["w3_conv"], (1, 1), "SAME",
                                     dimension_numbers=("NCHW", "OIHW", "NCHW"))
        v = _lrelu(v.transpose(1, 0, 2, 3).reshape(c_, m) + blk["b3"])
        t = (t + v) if shortcut else v
    a1 = _lrelu(p["w_cv3"] @ t + p["b_cv3"])
    out = _lrelu(p["w_cv4a"] @ a1 + p["w_cv4b"] @ a2 + p["b_cv4"])
    return out.reshape(-1, B, H, W).transpose(1, 0, 2, 3)


# ---------------------------------------------------------------------------
if __name__ == "__main__":
    key = jax.random.PRNGKey(0)
    kx, kp1, kp2 = jax.random.split(key, 3)

    B, c1, c2, H, W = 2, 16, 16, 16, 16
    x = jax.random.normal(kx, (B, c1, H, W), jnp.float32)

    fwd = jax.jit(bottleneck_csp_forward, static_argnames=("shortcut",))

    # n = 1 (module default): the whole block is 2 fused pallas_calls
    params1 = init_csp_params(kp1, c1, c2, n=1)
    out1 = jax.block_until_ready(fwd(x, params1, shortcut=True))
    assert out1.shape == (B, c2, H, W), out1.shape
    assert bool(jnp.all(jnp.isfinite(out1)))
    ref1 = reference_forward(x, params1, shortcut=True)
    err1 = float(jnp.max(jnp.abs(out1 - ref1)))
    assert err1 < 1e-2, f"n=1 mismatch vs reference: max abs err {err1}"

    # n = 2: exercises the mid (chained Bottleneck) kernel as well
    params2 = init_csp_params(kp2, c1, c2, n=2)
    out2 = jax.block_until_ready(fwd(x, params2, shortcut=True))
    assert out2.shape == (B, c2, H, W), out2.shape
    assert bool(jnp.all(jnp.isfinite(out2)))
    ref2 = reference_forward(x, params2, shortcut=True)
    err2 = float(jnp.max(jnp.abs(out2 - ref2)))
    assert err2 < 1e-2, f"n=2 mismatch vs reference: max abs err {err2}"

    print("KERNEL_OK")
</pallas_src>

<mosaic_0001>
module attributes {stable_mosaic.version = 11 : i64} {
  func.func @_stem_kernel(%arg0: i32, %arg1: memref<16x256xf32, #tpu.memory_space<vmem>>, %arg2: memref<8x16xf32, #tpu.memory_space<vmem>>, %arg3: memref<8x1xf32, #tpu.memory_space<vmem>>, %arg4: memref<8x16xf32, #tpu.memory_space<vmem>>, %arg5: memref<8x1xf32, #tpu.memory_space<vmem>>, %arg6: memref<8x8xf32, #tpu.memory_space<vmem>>, %arg7: memref<8x1xf32, #tpu.memory_space<vmem>>, %arg8: memref<8x256xf32, #tpu.memory_space<vmem>>, %arg9: memref<8x256xf32, #tpu.memory_space<vmem>>, %arg10: memref<8x256xf32, #tpu.memory_space<vmem>>) attributes {dimension_semantics = [#tpu.dimension_semantics<parallel>], iteration_bounds = array<i64: 2>, scalar_prefetch = 0 : i64, scratch_operands = 0 : i64, tpu.core_type = #tpu.core_type<tc>, window_params = [{transform_indices = @transform_0, window_bounds = array<i64: 16, 256>}, {pipeline_mode = #tpu.pipeline_mode<synchronous>, transform_indices = @transform_1, window_bounds = array<i64: 8, 16>}, {pipeline_mode = #tpu.pipeline_mode<synchronous>, transform_indices = @transform_2, window_bounds = array<i64: 8, 1>}, {pipeline_mode = #tpu.pipeline_mode<synchronous>, transform_indices = @transform_3, window_bounds = array<i64: 8, 16>}, {pipeline_mode = #tpu.pipeline_mode<synchronous>, transform_indices = @transform_4, window_bounds = array<i64: 8, 1>}, {pipeline_mode = #tpu.pipeline_mode<synchronous>, transform_indices = @transform_5, window_bounds = array<i64: 8, 8>}, {pipeline_mode = #tpu.pipeline_mode<synchronous>, transform_indices = @transform_6, window_bounds = array<i64: 8, 1>}, {transform_indices = @transform_7, window_bounds = array<i64: 8, 256>}, {transform_indices = @transform_8, window_bounds = array<i64: 8, 256>}, {transform_indices = @transform_9, window_bounds = array<i64: 8, 256>}]} {
    %c0 = arith.constant 0 : index
    %c0_0 = arith.constant 0 : index
    %0 = vector.load %arg1[%c0, %c0_0] : memref<16x256xf32, #tpu.memory_space<vmem>>, vector<16x256xf32>
    %c0_1 = arith.constant 0 : index
    %c0_2 = arith.constant 0 : index
    %1 = vector.load %arg2[%c0_1, %c0_2] : memref<8x16xf32, #tpu.memory_space<vmem>>, vector<8x16xf32>
    %cst = arith.constant dense<0.000000e+00> : vector<8x256xf32>
    %2 = tpu.matmul %1, %0, %cst {dimension_numbers = #tpu.dot_dimension_numbers<[1], [0], [0], [1], [0, 0, 1, 1], [], []>} : vector<8x16xf32>, vector<16x256xf32>, vector<8x256xf32> -> vector<8x256xf32>
    %c0_3 = arith.constant 0 : index
    %c0_4 = arith.constant 0 : index
    %3 = vector.load %arg3[%c0_3, %c0_4] : memref<8x1xf32, #tpu.memory_space<vmem>>, vector<8x1xf32>
    %4 = vector.broadcast %3 : vector<8x1xf32> to vector<8x256xf32>
    %5 = arith.addf %2, %4 : vector<8x256xf32>
    %cst_5 = arith.constant 1.000000e-01 : f32
    %6 = vector.broadcast %cst_5 : f32 to vector<8x256xf32>
    %7 = arith.mulf %6, %5 : vector<8x256xf32>
    %8 = arith.maximumf %5, %7 : vector<8x256xf32>
    %c0_6 = arith.constant 0 : index
    %c0_7 = arith.constant 0 : index
    %9 = vector.load %arg8[%c0_6, %c0_7] : memref<8x256xf32, #tpu.memory_space<vmem>>, vector<8x256xf32>
    tpu.vector_store %arg8[%c0_6, %c0_7], %8 {strides = array<i32>} : memref<8x256xf32, #tpu.memory_space<vmem>>, vector<8x256xf32>,
    %c0_8 = arith.constant 0 : index
    %c0_9 = arith.constant 0 : index
    %10 = vector.load %arg4[%c0_8, %c0_9] : memref<8x16xf32, #tpu.memory_space<vmem>>, vector<8x16xf32>
    %cst_10 = arith.constant dense<0.000000e+00> : vector<8x256xf32>
    %11 = tpu.matmul %10, %0, %cst_10 {dimension_numbers = #tpu.dot_dimension_numbers<[1], [0], [0], [1], [0, 0, 1, 1], [], []>} : vector<8x16xf32>, vector<16x256xf32>, vector<8x256xf32> -> vector<8x256xf32>
    %c0_11 = arith.constant 0 : index
    %c0_12 = arith.constant 0 : index
    %12 = vector.load %arg5[%c0_11, %c0_12] : memref<8x1xf32, #tpu.memory_space<vmem>>, vector<8x1xf32>
    %13 = vector.broadcast %12 : vector<8x1xf32> to vector<8x256xf32>
    %14 = arith.addf %11, %13 : vector<8x256xf32>
    %cst_13 = arith.constant 1.000000e-01 : f32
    %15 = vector.broadcast %cst_13 : f32 to vector<8x256xf32>
    %16 = arith.mulf %15, %14 : vector<8x256xf32>
    %17 = arith.maximumf %14, %16 : vector<8x256xf32>
    %c0_14 = arith.constant 0 : index
    %c0_15 = arith.constant 0 : index
    %18 = vector.load %arg9[%c0_14, %c0_15] : memref<8x256xf32, #tpu.memory_space<vmem>>, vector<8x256xf32>
    tpu.vector_store %arg9[%c0_14, %c0_15], %17 {strides = array<i32>} : memref<8x256xf32, #tpu.memory_space<vmem>>, vector<8x256xf32>,
    %c0_16 = arith.constant 0 : index
    %c0_17 = arith.constant 0 : index
    %19 = vector.load %arg6[%c0_16, %c0_17] : memref<8x8xf32, #tpu.memory_space<vmem>>, vector<8x8xf32>
    %cst_18 = arith.constant dense<0.000000e+00> : vector<8x256xf32>
    %20 = tpu.matmul %19, %17, %cst_18 {dimension_numbers = #tpu.dot_dimension_numbers<[1], [0], [0], [1], [0, 0, 1, 1], [], []>} : vector<8x8xf32>, vector<8x256xf32>, vector<8x256xf32> -> vector<8x256xf32>
    %c0_19 = arith.constant 0 : index
    %c0_20 = arith.constant 0 : index
    %21 = vector.load %arg7[%c0_19, %c0_20] : memref<8x1xf32, #tpu.memory_space<vmem>>, vector<8x1xf32>
    %22 = vector.broadcast %21 : vector<8x1xf32> to vector<8x256xf32>
    %23 = arith.addf %20, %22 : vector<8x256xf32>
    %cst_21 = arith.constant 1.000000e-01 : f32
    %24 = vector.broadcast %cst_21 : f32 to vector<8x256xf32>
    %25 = arith.mulf %24, %23 : vector<8x256xf32>
    %26 = arith.maximumf %23, %25 : vector<8x256xf32>
    %c0_22 = arith.constant 0 : index
    %c0_23 = arith.constant 0 : index
    %27 = vector.load %arg10[%c0_22, %c0_23] : memref<8x256xf32, #tpu.memory_space<vmem>>, vector<8x256xf32>
    tpu.vector_store %arg10[%c0_22, %c0_23], %26 {strides = array<i32>} : memref<8x256xf32, #tpu.memory_space<vmem>>, vector<8x256xf32>,
    return
  }
  func.func @transform_0(%arg0: i32) -> (i32, i32) {
    %c0_i32 = arith.constant 0 : i32
    %c0_i32_0 = arith.constant 0 : i32
    return %c0_i32, %arg0 : i32, i32
  }
  func.func @transform_1(%arg0: i32) -> (i32, i32) {
    %c0_i32 = arith.constant 0 : i32
    %c0_i32_0 = arith.constant 0 : i32
    %c0_i32_1 = arith.constant 0 : i32
    return %c0_i32, %c0_i32_0 : i32, i32
  }
  func.func @transform_2(%arg0: i32) -> (i32, i32) {
    %c0_i32 = arith.constant 0 : i32
    %c0_i32_0 = arith.constant 0 : i32
    %c0_i32_1 = arith.constant 0 : i32
    return %c0_i32, %c0_i32_0 : i32, i32
  }
  func.func @transform_3(%arg0: i32) -> (i32, i32) {
    %c0_i32 = arith.constant 0 : i32
    %c0_i32_0 = arith.constant 0 : i32
    %c0_i32_1 = arith.constant 0 : i32
    return %c0_i32, %c0_i32_0 : i32, i32
  }
  func.func @transform_4(%arg0: i32) -> (i32, i32) {
    %c0_i32 = arith.constant 0 : i32
    %c0_i32_0 = arith.constant 0 : i32
    %c0_i32_1 = arith.constant 0 : i32
    return %c0_i32, %c0_i32_0 : i32, i32
  }
  func.func @transform_5(%arg0: i32) -> (i32, i32) {
    %c0_i32 = arith.constant 0 : i32
    %c0_i32_0 = arith.constant 0 : i32
    %c0_i32_1 = arith.constant 0 : i32
    return %c0_i32, %c0_i32_0 : i32, i32
  }
  func.func @transform_6(%arg0: i32) -> (i32, i32) {
    %c0_i32 = arith.constant 0 : i32
    %c0_i32_0 = arith.constant 0 : i32
    %c0_i32_1 = arith.constant 0 : i32
    return %c0_i32, %c0_i32_0 : i32, i32
  }
  func.func @transform_7(%arg0: i32) -> (i32, i32) {
    %c0_i32 = arith.constant 0 : i32
    %c0_i32_0 = arith.constant 0 : i32
    return %c0_i32, %arg0 : i32, i32
  }
  func.func @transform_8(%arg0: i32) -> (i32, i32) {
    %c0_i32 = arith.constant 0 : i32
    %c0_i32_0 = arith.constant 0 : i32
    return %c0_i32, %arg0 : i32, i32
  }
  func.func @transform_9(%arg0: i32) -> (i32, i32) {
    %c0_i32 = arith.constant 0 : i32
    %c0_i32_0 = arith.constant 0 : i32
    return %c0_i32, %arg0 : i32, i32
  }
}

module attributes {stable_mosaic.version = 11 : i64} {
  func.func @_out_kernel(%arg0: i32, %arg1: memref<8x256xf32, #tpu.memory_space<vmem>>, %arg2: memref<72x256xf32, #tpu.memory_space<vmem>>, %arg3: memref<8x256xf32, #tpu.memory_space<vmem>>, %arg4: memref<8x72xf32, #tpu.memory_space<vmem>>, %arg5: memref<8x1xf32, #tpu.memory_space<vmem>>, %arg6: memref<8x8xf32, #tpu.memory_space<vmem>>, %arg7: memref<8x1xf32, #tpu.memory_space<vmem>>, %arg8: memref<16x8xf32, #tpu.memory_space<vmem>>, %arg9: memref<16x8xf32, #tpu.memory_space<vmem>>, %arg10: memref<16x1xf32, #tpu.memory_space<vmem>>, %arg11: memref<16x256xf32, #tpu.memory_space<vmem>>) attributes {dimension_semantics = [#tpu.dimension_semantics<parallel>], iteration_bounds = array<i64: 2>, scalar_prefetch = 0 : i64, scratch_operands = 0 : i64, tpu.core_type = #tpu.core_type<tc>, window_params = [{transform_indices = @transform_0, window_bounds = array<i64: 8, 256>}, {transform_indices = @transform_1, window_bounds = array<i64: 72, 256>}, {transform_indices = @transform_2, window_bounds = array<i64: 8, 256>}, {pipeline_mode = #tpu.pipeline_mode<synchronous>, transform_indices = @transform_3, window_bounds = array<i64: 8, 72>}, {pipeline_mode = #tpu.pipeline_mode<synchronous>, transform_indices = @transform_4, window_bounds = array<i64: 8, 1>}, {pipeline_mode = #tpu.pipeline_mode<synchronous>, transform_indices = @transform_5, window_bounds = array<i64: 8, 8>}, {pipeline_mode = #tpu.pipeline_mode<synchronous>, transform_indices = @transform_6, window_bounds = array<i64: 8, 1>}, {pipeline_mode = #tpu.pipeline_mode<synchronous>, transform_indices = @transform_7, window_bounds = array<i64: 16, 8>}, {pipeline_mode = #tpu.pipeline_mode<synchronous>, transform_indices = @transform_8, window_bounds = array<i64: 16, 8>}, {pipeline_mode = #tpu.pipeline_mode<synchronous>, transform_indices = @transform_9, window_bounds = array<i64: 16, 1>}, {transform_indices = @transform_10, window_bounds = array<i64: 16, 256>}]} {
    %c0 = arith.constant 0 : index
    %c0_0 = arith.constant 0 : index
    %0 = vector.load %arg4[%c0, %c0_0] : memref<8x72xf32, #tpu.memory_space<vmem>>, vector<8x72xf32>
    %c0_1 = arith.constant 0 : index
    %c0_2 = arith.constant 0 : index
    %1 = vector.load %arg2[%c0_1, %c0_2] : memref<72x256xf32, #tpu.memory_space<vmem>>, vector<72x256xf32>
    %cst = arith.constant dense<0.000000e+00> : vector<8x256xf32>
    %2 = tpu.matmul %0, %1, %cst {dimension_numbers = #tpu.dot_dimension_numbers<[1], [0], [0], [1], [0, 0, 1, 1], [], []>} : vector<8x72xf32>, vector<72x256xf32>, vector<8x256xf32> -> vector<8x256xf32>
    %c0_3 = arith.constant 0 : index
    %c0_4 = arith.constant 0 : index
    %3 = vector.load %arg5[%c0_3, %c0_4] : memref<8x1xf32, #tpu.memory_space<vmem>>, vector<8x1xf32>
    %4 = vector.broadcast %3 : vector<8x1xf32> to vector<8x256xf32>
    %5 = arith.addf %2, %4 : vector<8x256xf32>
    %cst_5 = arith.constant 1.000000e-01 : f32
    %6 = vector.broadcast %cst_5 : f32 to vector<8x256xf32>
    %7 = arith.mulf %6, %5 : vector<8x256xf32>
    %8 = arith.maximumf %5, %7 : vector<8x256xf32>
    %c0_6 = arith.constant 0 : index
    %c0_7 = arith.constant 0 : index
    %9 = vector.load %arg1[%c0_6, %c0_7] : memref<8x256xf32, #tpu.memory_space<vmem>>, vector<8x256xf32>
    %10 = arith.addf %9, %8 : vector<8x256xf32>
    %c0_8 = arith.constant 0 : index
    %c0_9 = arith.constant 0 : index
    %11 = vector.load %arg6[%c0_8, %c0_9] : memref<8x8xf32, #tpu.memory_space<vmem>>, vector<8x8xf32>
    %cst_10 = arith.constant dense<0.000000e+00> : vector<8x256xf32>
    %12 = tpu.matmul %11, %10, %cst_10 {dimension_numbers = #tpu.dot_dimension_numbers<[1], [0], [0], [1], [0, 0, 1, 1], [], []>} : vector<8x8xf32>, vector<8x256xf32>, vector<8x256xf32> -> vector<8x256xf32>
    %c0_11 = arith.constant 0 : index
    %c0_12 = arith.constant 0 : index
    %13 = vector.load %arg7[%c0_11, %c0_12] : memref<8x1xf32, #tpu.memory_space<vmem>>, vector<8x1xf32>
    %14 = vector.broadcast %13 : vector<8x1xf32> to vector<8x256xf32>
    %15 = arith.addf %12, %14 : vector<8x256xf32>
    %cst_13 = arith.constant 1.000000e-01 : f32
    %16 = vector.broadcast %cst_13 : f32 to vector<8x256xf32>
    %17 = arith.mulf %16, %15 : vector<8x256xf32>
    %18 = arith.maximumf %15, %17 : vector<8x256xf32>
    %c0_14 = arith.constant 0 : index
    %c0_15 = arith.constant 0 : index
    %19 = vector.load %arg8[%c0_14, %c0_15] : memref<16x8xf32, #tpu.memory_space<vmem>>, vector<16x8xf32>
    %cst_16 = arith.constant dense<0.000000e+00> : vector<16x256xf32>
    %20 = tpu.matmul %19, %18, %cst_16 {dimension_numbers = #tpu.dot_dimension_numbers<[1], [0], [0], [1], [0, 0, 1, 1], [], []>} : vector<16x8xf32>, vector<8x256xf32>, vector<16x256xf32> -> vector<16x256xf32>
    %c0_17 = arith.constant 0 : index
    %c0_18 = arith.constant 0 : index
    %21 = vector.load %arg9[%c0_17, %c0_18] : memref<16x8xf32, #tpu.memory_space<vmem>>, vector<16x8xf32>
    %c0_19 = arith.constant 0 : index
    %c0_20 = arith.constant 0 : index
    %22 = vector.load %arg3[%c0_19, %c0_20] : memref<8x256xf32, #tpu.memory_space<vmem>>, vector<8x256xf32>
    %cst_21 = arith.constant dense<0.000000e+00> : vector<16x256xf32>
    %23 = tpu.matmul %21, %22, %cst_21 {dimension_numbers = #tpu.dot_dimension_numbers<[1], [0], [0], [1], [0, 0, 1, 1], [], []>} : vector<16x8xf32>, vector<8x256xf32>, vector<16x256xf32> -> vector<16x256xf32>
    %24 = arith.addf %20, %23 : vector<16x256xf32>
    %c0_22 = arith.constant 0 : index
    %c0_23 = arith.constant 0 : index
    %25 = vector.load %arg10[%c0_22, %c0_23] : memref<16x1xf32, #tpu.memory_space<vmem>>, vector<16x1xf32>
    %26 = vector.broadcast %25 : vector<16x1xf32> to vector<16x256xf32>
    %27 = arith.addf %24, %26 : vector<16x256xf32>
    %cst_24 = arith.constant 1.000000e-01 : f32
    %28 = vector.broadcast %cst_24 : f32 to vector<16x256xf32>
    %29 = arith.mulf %28, %27 : vector<16x256xf32>
    %30 = arith.maximumf %27, %29 : vector<16x256xf32>
    %c0_25 = arith.constant 0 : index
    %c0_26 = arith.constant 0 : index
    %31 = vector.load %arg11[%c0_25, %c0_26] : memref<16x256xf32, #tpu.memory_space<vmem>>, vector<16x256xf32>
    tpu.vector_store %arg11[%c0_25, %c0_26], %30 {strides = array<i32>} : memref<16x256xf32, #tpu.memory_space<vmem>>, vector<16x256xf32>,
    return
  }
  func.func @transform_0(%arg0: i32) -> (i32, i32) {
    %c0_i32 = arith.constant 0 : i32
    %c0_i32_0 = arith.constant 0 : i32
    return %c0_i32, %arg0 : i32, i32
  }
  func.func @transform_1(%arg0: i32) -> (i32, i32) {
    %c0_i32 = arith.constant 0 : i32
    %c0_i32_0 = arith.constant 0 : i32
    return %c0_i32, %arg0 : i32, i32
  }
  func.func @transform_2(%arg0: i32) -> (i32, i32) {
    %c0_i32 = arith.constant 0 : i32
    %c0_i32_0 = arith.constant 0 : i32
    return %c0_i32, %arg0 : i32, i32
  }
  func.func @transform_3(%arg0: i32) -> (i32, i32) {
    %c0_i32 = arith.constant 0 : i32
    %c0_i32_0 = arith.constant 0 : i32
    %c0_i32_1 = arith.constant 0 : i32
    return %c0_i32, %c0_i32_0 : i32, i32
  }
  func.func @transform_4(%arg0: i32) -> (i32, i32) {
    %c0_i32 = arith.constant 0 : i32
    %c0_i32_0 = arith.constant 0 : i32
    %c0_i32_1 = arith.constant 0 : i32
    return %c0_i32, %c0_i32_0 : i32, i32
  }
  func.func @transform_5(%arg0: i32) -> (i32, i32) {
    %c0_i32 = arith.constant 0 : i32
    %c0_i32_0 = arith.constant 0 : i32
    %c0_i32_1 = arith.constant 0 : i32
    return %c0_i32, %c0_i32_0 : i32, i32
  }
  func.func @transform_6(%arg0: i32) -> (i32, i32) {
    %c0_i32 = arith.constant 0 : i32
    %c0_i32_0 = arith.constant 0 : i32
    %c0_i32_1 = arith.constant 0 : i32
    return %c0_i32, %c0_i32_0 : i32, i32
  }
  func.func @transform_7(%arg0: i32) -> (i32, i32) {
    %c0_i32 = arith.constant 0 : i32
    %c0_i32_0 = arith.constant 0 : i32
    %c0_i32_1 = arith.constant 0 : i32
    return %c0_i32, %c0_i32_0 : i32, i32
  }
  func.func @transform_8(%arg0: i32) -> (i32, i32) {
    %c0_i32 = arith.constant 0 : i32
    %c0_i32_0 = arith.constant 0 : i32
    %c0_i32_1 = arith.constant 0 : i32
    return %c0_i32, %c0_i32_0 : i32, i32
  }
  func.func @transform_9(%arg0: i32) -> (i32, i32) {
    %c0_i32 = arith.constant 0 : i32
    %c0_i32_0 = arith.constant 0 : i32
    %c0_i32_1 = arith.constant 0 : i32
    return %c0_i32, %c0_i32_0 : i32, i32
  }
  func.func @transform_10(%arg0: i32) -> (i32, i32) {
    %c0_i32 = arith.constant 0 : i32
    %c0_i32_0 = arith.constant 0 : i32
    return %c0_i32, %arg0 : i32, i32
  }
}

</mosaic_0001>

<bundles_post_ra>
// kernel: bottleneck_csp_forward.2
= control target key start
LH: loop header
LB: loop body
LE: loop exit
PB: predicated region body
PF: predicated region fallthrough
CT: control target
= control target key end

     0   :  { %s918_s30 = smov 0   ;;  %s920_s10 = smov 0   ;;  %s999_s0 = inlined_call_operand.vmem [shape: f32[16,512], index: 0, kind: input, shape index: {}]   ;;  %s1000_s1 = inlined_call_operand.vmem [shape: f32[8,16], index: 1, kind: input, shape index: {}]   ;;  %s1001_s2 = inlined_call_operand.vmem [shape: f32[8,1], index: 2, kind: input, shape index: {}]   ;;  %s1002_s3 = inlined_call_operand.vmem [shape: f32[8,16], index: 3, kind: input, shape index: {}]   ;;  %s1003_s4 = inlined_call_operand.vmem [shape: f32[8,1], index: 4, kind: input, shape index: {}]   ;;  %s1004_s5 = inlined_call_operand.vmem [shape: f32[8,8], index: 5, kind: input, shape index: {}]   ;;  %s1005_s6 = inlined_call_operand.vmem [shape: f32[8,1], index: 6, kind: input, shape index: {}]   ;;  %s1006_s7 = inlined_call_operand.vmem [shape: f32[8,512], index: 7, kind: output, shape index: {0}]   ;;  %s1007_s8 = inlined_call_operand.vmem [shape: f32[8,512], index: 8, kind: output, shape index: {1}]   ;;  %s1008_s9 = inlined_call_operand.vmem [shape: f32[8,512], index: 9, kind: output, shape index: {2}]  }
   0x1   :  { %s922_s11 = smov 0  }
   0x2 LB: > { %s785_s12 = sadd.s32 4294967295, %s864_s11   ;;  %s935_s13 = sadd.s32 1, %s864_s11   ;;  %s864_s11 = sphi %s922_s11, %s1011_s11   ;;  %s860_s10 = sphi %s920_s10, %s1010_s10   ;;  %s856_s30 = sphi %s918_s30, %s1009_s30  }
   0x3   : > { %s24_s14 = ssub.s32 %s864_s11, %s935_s13  ;;  %s27_s15 = sadd.s32 1, %s860_s10 }
   0x4   : > { %p25_p0 = scmp.eq.s32.totalorder %s24_s14, 0  ;;  %p34_p1 = scmp.ne.s32.totalorder %s860_s10, %s856_s30 }
   0x5   : > { %p35_p2 = scmp.eq.s32.totalorder %s864_s11, 0  ;;  %p788_p4 = scmp.ge.s32.totalorder %s864_s11, 2 }
   0x6   : > { %s944_s16 = scalar_select %p25_p0, %s860_s10, %s27_s15  }
   0x7   : > { %p36_p3 = por %p35_p2, %p34_p1  ;;  %282 = sbr.rel (%p788_p4) target bundleno = 21 (0x15), region = 40 }
   0xe   : > { %285 = sbr.rel (!%p36_p3) target bundleno = 21 (0x15), region = 44  ;;  %s287_s17 = sand.u32 (%p36_p3), 1, %s860_s10  }
   0xf   : > { %s805_s18 = sshll.u32 (%p36_p3), %s864_s11, 4  ;;  %s789_s19 = sshll.u32 (%p36_p3), %s287_s17, 5 }
  0x10   : > { %s292_s22 = scalar_lea.vmem (%p36_p3), %s999_s0, %s805_s18  ;;  %s289_s23 = scalar_lea.vmem (%p36_p3), [#allocation2], %s789_s19 }
  0x11   : > { %v305_v0 = vld [vmem:[%s292_s22] sm:$0xff] (%p36_p3)  ;;  %v307_v1 = vld [vmem:[%s292_s22 + $0x8] sm:$0xff] (%p36_p3) }
  0x12   : > { %v309_v2 = vld [vmem:[%s292_s22 + $0x20] sm:$0xff] (%p36_p3)  ;;  %306 = vst [vmem:[%s289_s23] sm:$0xff] (%p36_p3), %v305_v0  ;;  %308 = vst [vmem:[%s289_s23 + $0x8] sm:$0xff] (%p36_p3), %v307_v1  ;;  %v311_v3 = vld [vmem:[%s292_s22 + $0x28] sm:$0xff] (%p36_p3) }
  0x13   : > { %310 = vst [vmem:[%s289_s23 + $0x10] sm:$0xff] (%p36_p3), %v309_v2  ;;  %312 = vst [vmem:[%s289_s23 + $0x18] sm:$0xff] (%p36_p3), %v311_v3 }
  0x15 PF: > { %p792_p5 = scmp.ge.s32.totalorder %s864_s11, 1  ;;  %p317_p6 = scmp.lt.s32.totalorder %s864_s11, 3 }
  0x17   : > { %p318_p7 = pnand %p792_p5, %p317_p6 }
  0x18   : > { %s324_s24 = sand.u32 (!%p318_p7), 1, %s856_s30   ;;  %v866_v4 = vmov (!%p318_p7), 0.0   ;;  %v481_v5 = vld [vmem:[%s1003_s4] sm:$0xff] (!%p318_p7)  ;;  %v867_v6 = vmov (!%p318_p7), 0   ;;  %vm399_vm0 = vcmask (!%p318_p7), 130048   ;;  %s794_s21 = sshll.u32 (!%p318_p7), %s785_s12, 1 }
  0x19   : > { %321 = sbr.rel (%p318_p7) target bundleno = 475 (0x1db), region = 67  ;;  %s793_s25 = sshll.u32 (!%p318_p7), %s324_s24, 5  ;;  %467 = vmatprep.mubr.f32.mxu0 (!%p318_p7), %v866_v4  ;;  %554 = vmatprep.mubr.f32.mxu1 (!%p318_p7), %v866_v4  ;;  %v393_v13 = vld [vmem:[%s1001_s2] sm:$0xff] (!%p318_p7)  ;;  %vm574_vm1 = vcmask (!%p318_p7), 64512  }
  0x1a   : > { %840 = vset.pattern.permute.xlu0 (!%p318_p7), %v867_v6  ;;  %841 = vset.pattern.permute.xlu1 (!%p318_p7), %v867_v6  ;;  %s326_s28 = scalar_lea.vmem (!%p318_p7), [#allocation2], %s793_s25  ;;  %v392_v14 = vld [vmem:[%s1000_s1] sm:$0xff] (!%p318_p7)  ;;  %p371_p8 = scmp.lt.s32.totalorder (!%p318_p7), %s794_s21, 3 }
  0x1b   : > { %v389_v7 = vld [vmem:[%s326_s28 + $0x8] sm:$0xff] (!%p318_p7)  ;;  %v391_v8 = vld [vmem:[%s326_s28 + $0x18] sm:$0xff] (!%p318_p7)  ;;  %v388_v9 = vld [vmem:[%s326_s28] sm:$0xff] (!%p318_p7)  ;;  %484 = vperm.xlu0 (!%p318_p7), %840, %v481_v5  }
  0x1c   : > { %v806_v10 = vpack.c.bf16 (!%p318_p7), %v391_v8, %v389_v7  ;;  %v390_v11 = vld [vmem:[%s326_s28 + $0x10] sm:$0xff] (!%p318_p7)  ;;  %v480_v15 = vld [vmem:[%s1002_s3] sm:$0xff] (!%p318_p7) }
  0x1d   : > { %v808_v12 = vpack.c.bf16 (!%p318_p7), %v390_v11, %v388_v9  ;;  %v568_v16 = vld [vmem:[%s1005_s6] sm:$0xff] (!%p318_p7) }
  0x1e   : > { %807 = vmatprep.subr.bf16.mxu0 (!%p318_p7), %v806_v10  ;;  %811 = vmatprep.subr.bf16.mxu1 (!%p318_p7), %v806_v10  ;;  %v567_v35 = vld [vmem:[%s1004_s5] sm:$0xff] (!%p318_p7) }
  0x1f   : > { %809 = vmatpush1.bf16.msra.mxu0 (!%p318_p7), %v808_v12  ;;  %813 = vmatpush1.bf16.msra.mxu1 (!%p318_p7), %v808_v12 }
  0x20   : > { %396 = vperm.xlu0 %840, %v393_v13   ;;  %571 = vperm.xlu1 %841, %v568_v16   ;;  %s1013_s21 = smov (!%p371_p8, %s794_s21), 3 }
  0x21   : > { %s972_s22 = sshll.u32 %s1013_s21, 3 }
  0x22   : > { %800 = vmatmul.mubr.msk.f32.vlgmr.msra.gmra.mrb[0].mxu0 %vm399_vm0, %v392_v14  ;;  %801 = vmatmul.mubr.msk.f32.vlgmr.msra.gmra.mrb[0].mxu1 %vm399_vm0, %v480_v15  ;;  %s374_s23 = scalar_lea.vmem %s1006_s7, %s972_s22  ;;  %s380_s26 = scalar_lea.vmem %s1007_s8, %s972_s22 }
  0x23   : > { %642 = vmatprep.mubr.f32.mxu0 %v866_v4  ;;  %s386_s14 = scalar_lea.vmem %s1008_s9, %s972_s22 }
  0x9a   : > { %v485_v17 = vpop.permute.xlu0 %484 }
  0x9f   : > { %v397_v18 = vpop.permute.xlu0 %396  ;;  %v572_v36 = vpop.permute.xlu1 %571 }
  0xf5   : > { %v469_v19 = vpop.f32.mrb[0].mxu0  ;;  %v556_v20 = vpop.f32.mrb[0].mxu1 }
  0xf6   : > { %v470_v21 = vadd.f32 %v469_v19, %v397_v18  ;;  %v557_v22 = vadd.f32 %v556_v20, %v485_v17  ;;  %v471_v23 = vpop.f32.mrb[1].mxu0  ;;  %v558_v24 = vpop.f32.mrb[1].mxu1 }
  0xf7   : > { %v472_v25 = vadd.f32 %v471_v23, %v397_v18  ;;  %v559_v26 = vadd.f32 %v558_v24, %v485_v17 }
  0xf8   : > { %v474_v27 = vmul.f32 0.1, %v470_v21  ;;  %v561_v28 = vmul.f32 0.1, %v557_v22 }
  0xf9   : > { %v475_v29 = vmul.f32 0.1, %v472_v25  ;;  %v562_v30 = vmul.f32 0.1, %v559_v26 }
  0xfa   : > { %v476_v31 = vmax.f32 %v470_v21, %v474_v27  ;;  %v563_v32 = vmax.f32 %v557_v22, %v561_v28 }
  0xfb   : > { %v477_v33 = vmax.f32 %v472_v25, %v475_v29  ;;  %v564_v34 = vmax.f32 %v559_v26, %v562_v30 }
  0xfc   : > { %478 = vst [vmem:[%s374_s23] sm:$0xff] %v476_v31  ;;  %565 = vst [vmem:[%s380_s26] sm:$0xff] %v563_v32 }
  0xfd   : > { %479 = vst [vmem:[%s374_s23 + $0x8] sm:$0xff] %v477_v33  ;;  %566 = vst [vmem:[%s380_s26 + $0x8] sm:$0xff] %v564_v34  ;;  %578 = vmatprep.subr.mxu0 %v564_v34 }
  0xfe   : > { %579 = vmatpush1.msra.mxu0 %v563_v32 }
  0xff   : > { %802 = vmatmul.mubr.msk.f32.vlgmr.msra.gmra.mrb[2].mxu0 %vm574_vm1, %v567_v35 }
 0x1d2   : > { %v644_v37 = vpop.f32.mrb[2].mxu0 }
 0x1d3   : > { %v645_v38 = vadd.f32 %v644_v37, %v572_v36  ;;  %v646_v39 = vpop.f32.mrb[3].mxu0 }
 0x1d4   : > { %v647_v40 = vadd.f32 %v646_v39, %v572_v36 }
 0x1d5   : > { %v649_v41 = vmul.f32 0.1, %v645_v38 }
 0x1d6   : > { %v650_v42 = vmul.f32 0.1, %v647_v40 }
 0x1d7   : > { %v651_v43 = vmax.f32 %v645_v38, %v649_v41 }
 0x1d8   : > { %v652_v44 = vmax.f32 %v647_v40, %v650_v42 }
 0x1d9   : > { %653 = vst [vmem:[%s386_s14] sm:$0xff] %v651_v43 }
 0x1da   : > { %654 = vst [vmem:[%s386_s14 + $0x8] sm:$0xff] %v652_v44 }
 0x1db PF: > { %p17_p9 = scmp.ge.s32.totalorder %s935_s13, 4   ;;  %s1009_s30 = smov %s860_s10 }
 0x1dc   : > { %s1010_s10 = smov %s944_s16  ;;  %s1011_s11 = smov %s935_s13 }
 0x1dd   :  { %19 = sbr.rel (!%p17_p9) target bundleno = 2 (0x2), region = 130 }

// kernel: bottleneck_csp_forward.3
= control target key start
LH: loop header
LB: loop body
LE: loop exit
PB: predicated region body
PF: predicated region fallthrough
CT: control target
= control target key end

     0   :  { %s1117_s13 = smov 0   ;;  %s1119_s14 = smov 0   ;;  %s1269_s0 = inlined_call_operand.vmem [shape: f32[8,512], index: 0, kind: input, shape index: {}]   ;;  %s1270_s1 = inlined_call_operand.vmem [shape: f32[72,512], index: 1, kind: input, shape index: {}]   ;;  %s1271_s2 = inlined_call_operand.vmem [shape: f32[8,512], index: 2, kind: input, shape index: {}]   ;;  %s1272_s3 = inlined_call_operand.vmem [shape: f32[8,72], index: 3, kind: input, shape index: {}]   ;;  %s1273_s4 = inlined_call_operand.vmem [shape: f32[8,1], index: 4, kind: input, shape index: {}]   ;;  %s1274_s5 = inlined_call_operand.vmem [shape: f32[8,8], index: 5, kind: input, shape index: {}]   ;;  %s1275_s6 = inlined_call_operand.vmem [shape: f32[8,1], index: 6, kind: input, shape index: {}]   ;;  %s1276_s7 = inlined_call_operand.vmem [shape: f32[16,8], index: 7, kind: input, shape index: {}]   ;;  %s1277_s8 = inlined_call_operand.vmem [shape: f32[16,8], index: 8, kind: input, shape index: {}]   ;;  %s1278_s9 = inlined_call_operand.vmem [shape: f32[16,1], index: 9, kind: input, shape index: {}]   ;;  %s1279_s10 = inlined_call_operand.vmem [shape: f32[16,512], index: 10, kind: output, shape index: {}]  }
   0x1   :  { %s1121_s15 = smov 0  }
   0x2 LB: > { %s1133_s16 = sadd.s32 4294967295, %s1058_s15   ;;  %s1136_s17 = sadd.s32 1, %s1058_s15   ;;  %s1058_s15 = sphi %s1121_s15, %s1283_s15   ;;  %s1054_s14 = sphi %s1119_s14, %s1282_s14   ;;  %s1050_s13 = sphi %s1117_s13, %s1281_s13  }
   0x3   : > { %s50_s18 = ssub.s32 %s1058_s15, %s1136_s17  ;;  %s53_s19 = sadd.s32 1, %s1054_s14 }
   0x4   : > { %p51_p0 = scmp.eq.s32.totalorder %s50_s18, 0  ;;  %p60_p1 = scmp.ne.s32.totalorder %s1054_s14, %s1050_s13 }
   0x5   : > { %p61_p2 = scmp.eq.s32.totalorder %s1058_s15, 0  ;;  %p263_p3 = scmp.eq.s32.totalorder %s1133_s16, 1 }
   0x6   : > { %s1146_s20 = scalar_select %p51_p0, %s1054_s14, %s53_s19  }
   0x7   : > { %p62_p4 = por %p61_p2, %p60_p1  ;;  %p1148_p5 = por %p263_p3, %p60_p1 }
   0x8   : > { %p964_p6 = scmp.ge.s32.totalorder %s1058_s15, 2 }
   0xa   : > { %306 = sbr.rel (%p964_p6) target bundleno = 30 (0x1e), region = 44 }
  0x11   : > { %318 = sbr.rel (!%p62_p4) target bundleno = 30 (0x1e), region = 52  ;;  %s320_s22 = sand.u32 (%p62_p4), 1, %s1054_s14  }
  0x12   : > { %s984_s23 = sshll.u32 (%p62_p4), %s1058_s15, 4  ;;  %s1006_s24 = smul.u32 (%p62_p4), 144, %s320_s22 }
  0x13   : > { %s1158_s27 = scalar_lea.vmem (%p62_p4), %s1270_s1, %s984_s23 }
  0x14   : > { %v338_v0 = vld [vmem:[%s1158_s27] sm:$0xff] (%p62_p4)  ;;  %v340_v1 = vld [vmem:[%s1158_s27 + $0x8] sm:$0xff] (%p62_p4)  ;;  %s322_s28 = scalar_lea.vmem (%p62_p4), [#allocation2], %s1006_s24 }
  0x15   : > { %v342_v2 = vld [vmem:[%s1158_s27 + $0x20] sm:$0xff] (%p62_p4)  ;;  %v344_v3 = vld [vmem:[%s1158_s27 + $0x28] sm:$0xff] (%p62_p4)  ;;  %339 = vst [vmem:[%s322_s28] sm:$0xff] (%p62_p4), %v338_v0  ;;  %341 = vst [vmem:[%s322_s28 + $0x8] sm:$0xff] (%p62_p4), %v340_v1 }
  0x16   : > { %v346_v4 = vld [vmem:[%s1158_s27 + $0x40] sm:$0xff] (%p62_p4)  ;;  %v348_v5 = vld [vmem:[%s1158_s27 + $0x48] sm:$0xff] (%p62_p4)  ;;  %343 = vst [vmem:[%s322_s28 + $0x10] sm:$0xff] (%p62_p4), %v342_v2  ;;  %345 = vst [vmem:[%s322_s28 + $0x18] sm:$0xff] (%p62_p4), %v344_v3 }
  0x17   : > { %347 = vst [vmem:[%s322_s28 + $0x20] sm:$0xff] (%p62_p4), %v346_v4  ;;  %349 = vst [vmem:[%s322_s28 + $0x28] sm:$0xff] (%p62_p4), %v348_v5  ;;  %v350_v6 = vld [vmem:[%s1158_s27 + $0x60] sm:$0xff] (%p62_p4)  ;;  %v352_v7 = vld [vmem:[%s1158_s27 + $0x68] sm:$0xff] (%p62_p4) }
  0x18   : > { %v354_v8 = vld [vmem:[%s1158_s27 + $0x80] sm:$0xff]  ;;  %351 = vst [vmem:[%s322_s28 + $0x30] sm:$0xff] %v350_v6  ;;  %353 = vst [vmem:[%s322_s28 + $0x38] sm:$0xff] %v352_v7  ;;  %v356_v9 = vld [vmem:[%s1158_s27 + $0x88] sm:$0xff] }
  0x19   : > { %355 = vst [vmem:[%s322_s28 + $0x40] sm:$0xff] %v354_v8  ;;  %v358_v10 = vld [vmem:[%s1158_s27 + $0xa0] sm:$0xff]  ;;  %v360_v11 = vld [vmem:[%s1158_s27 + $0xa8] sm:$0xff]  ;;  %357 = vst [vmem:[%s322_s28 + $0x48] sm:$0xff] %v356_v9 }
  0x1a   : > { %359 = vst [vmem:[%s322_s28 + $0x50] sm:$0xff] %v358_v10  ;;  %361 = vst [vmem:[%s322_s28 + $0x58] sm:$0xff] %v360_v11  ;;  %v362_v12 = vld [vmem:[%s1158_s27 + $0xc0] sm:$0xff]  ;;  %v364_v13 = vld [vmem:[%s1158_s27 + $0xc8] sm:$0xff] }
  0x1b   : > { %v366_v14 = vld [vmem:[%s1158_s27 + $0xe0] sm:$0xff]  ;;  %363 = vst [vmem:[%s322_s28 + $0x60] sm:$0xff] %v362_v12  ;;  %365 = vst [vmem:[%s322_s28 + $0x68] sm:$0xff] %v364_v13  ;;  %v368_v15 = vld [vmem:[%s1158_s27 + $0xe8] sm:$0xff] }
  0x1c   : > { %367 = vst [vmem:[%s322_s28 + $0x70] sm:$0xff] %v366_v14  ;;  %v370_v16 = vld [vmem:[%s1158_s27 + $0x100] sm:$0xff]  ;;  %v372_v17 = vld [vmem:[%s1158_s27 + $0x108] sm:$0xff]  ;;  %369 = vst [vmem:[%s322_s28 + $0x78] sm:$0xff] %v368_v15 }
  0x1d   : > { %371 = vst [vmem:[%s322_s28 + $0x80] sm:$0xff] %v370_v16  ;;  %373 = vst [vmem:[%s322_s28 + $0x88] sm:$0xff] %v372_v17 }
  0x1e PF: > { %p967_p7 = scmp.ge.s32.totalorder %s1058_s15, 1  ;;  %p387_p8 = scmp.lt.s32.totalorder %s1058_s15, 3 }
  0x20   : > { %p388_p9 = pnand %p967_p7, %p387_p8 }
  0x21   : > { %s394_s29 = sand.u32 (!%p388_p9), 1, %s1050_s13   ;;  %v473_v18 = vld [vmem:[%s1273_s4] sm:$0xff] (!%p388_p9)  ;;  %v1060_v19 = vmov (!%p388_p9), 0.0   ;;  %v1061_v20 = vmov (!%p388_p9), 0   ;;  %vm479_vm0 = vcmask (!%p388_p9), 588800   ;;  %s969_s24 = sshll.u32 (!%p388_p9), %s1133_s16, 1 }
  0x22   : > { %391 = sbr.rel (%p388_p9) target bundleno = 735 (0x2df), region = 79  ;;  %547 = vmatprep.mubr.f32.mxu0 (!%p388_p9), %v1060_v19  ;;  %1034 = vset.pattern.permute.xlu0 (!%p388_p9), %v1061_v20  ;;  %v563_v21 = vld [vmem:[%s1275_s6] sm:$0xff] (!%p388_p9)  ;;  %p441_p10 = scmp.lt.s32.totalorder (!%p388_p9), %s969_s24, 3  ;;  %vm569_vm1 = vcmask (!%p388_p9), 64512   ;;  %v651_v2 = vld [vmem:[%s1277_s8 + $0x8] sm:$0xff] (!%p388_p9) }
  0x23   : > { %s1007_s12 = smul.u32 (!%p388_p9), 144, %s394_s29  ;;  %476 = vperm.xlu0 (!%p388_p9), %1034, %v473_v18   ;;  %637 = vmatprep.mubr.f32.mxu1 (!%p388_p9), %v1060_v19  ;;  %v454_v48 = vld [vmem:[%s1272_s3] sm:$0xff] (!%p388_p9)  ;;  %v821_v4 = vld [vmem:[%s1278_s9 + $0x8] sm:$0xff] (!%p388_p9) }
  0x24   : > { %1035 = vset.pattern.permute.xlu1 (!%p388_p9), %v1061_v20  ;;  %v562_v62 = vld [vmem:[%s1274_s5] sm:$0xff] (!%p388_p9)  ;;  %v649_v15 = vld [vmem:[%s1276_s7 + $0x8] sm:$0xff] (!%p388_p9) }
  0x25   : > { %s1191_s19 = scalar_lea.vmem (!%p388_p9), [#allocation2], %s1007_s12  ;;  %v650_v1 = vld [vmem:[%s1277_s8] sm:$0xff] (!%p388_p9) }
  0x26   : > { %v456_v22 = vld [vmem:[%s1191_s19 + $0x8] sm:$0xff] (!%p388_p9)  ;;  %v458_v23 = vld [vmem:[%s1191_s19 + $0x18] sm:$0xff] (!%p388_p9)  ;;  %v455_v24 = vld [vmem:[%s1191_s19] sm:$0xff] (!%p388_p9) }
  0x27   : > { %v986_v25 = vpack.c.bf16 (!%p388_p9), %v458_v23, %v456_v22  ;;  %v457_v26 = vld [vmem:[%s1191_s19 + $0x10] sm:$0xff] (!%p388_p9)  ;;  %v460_v27 = vld [vmem:[%s1191_s19 + $0x28] sm:$0xff] (!%p388_p9)  ;;  %v462_v28 = vld [vmem:[%s1191_s19 + $0x38] sm:$0xff] (!%p388_p9)  ;;  %566 = vperm.xlu0 (!%p388_p9), %1034, %v563_v21  }
  0x28   : > { %v988_v29 = vpack.c.bf16 (!%p388_p9), %v457_v26, %v455_v24  ;;  %v990_v30 = vpack.c.bf16 (!%p388_p9), %v462_v28, %v460_v27  ;;  %v459_v31 = vld [vmem:[%s1191_s19 + $0x20] sm:$0xff] (!%p388_p9)  ;;  %v461_v32 = vld [vmem:[%s1191_s19 + $0x30] sm:$0xff] (!%p388_p9)  ;;  %v464_v33 = vld [vmem:[%s1191_s19 + $0x48] sm:$0xff] (!%p388_p9) }
  0x29   : > { %987 = vmatprep.subr.bf16.mxu0 %v986_v25  ;;  %v466_v34 = vld [vmem:[%s1191_s19 + $0x58] sm:$0xff]  ;;  %v992_v35 = vpack.c.bf16 %v461_v32, %v459_v31  ;;  %v463_v37 = vld [vmem:[%s1191_s19 + $0x40] sm:$0xff]  ;;  %v465_v38 = vld [vmem:[%s1191_s19 + $0x50] sm:$0xff]  ;;  %s1285_s24 = smov (!%p441_p10, %s969_s24), 3  ;;  %s985_s13 = sshll.u32 (%p1148_p5), %s1133_s16, 4 }
  0x2a   : > { %989 = vmatpush1.bf16.msra.mxu0 %v988_v29  ;;  %v994_v36 = vpack.c.bf16 %v466_v34, %v464_v33  ;;  %v468_v39 = vld [vmem:[%s1191_s19 + $0x68] sm:$0xff]  ;;  %v470_v40 = vld [vmem:[%s1191_s19 + $0x78] sm:$0xff]  ;;  %v996_v41 = vpack.c.bf16 %v465_v38, %v463_v37  ;;  %v467_v43 = vld [vmem:[%s1191_s19 + $0x60] sm:$0xff]  ;;  %s970_s25 = sshll.u32 %s1285_s24, 3  ;;  %s857_s23 = scalar_lea.vmem (%p1148_p5), %s1279_s10, %s985_s13 }
  0x2b   : > { %991 = vmatprep.subr.bf16.mxu0 %v990_v30  ;;  %v998_v42 = vpack.c.bf16 %v470_v40, %v468_v39  ;;  %v469_v44 = vld [vmem:[%s1191_s19 + $0x70] sm:$0xff]  ;;  %v472_v46 = vld [vmem:[%s1191_s19 + $0x88] sm:$0xff]  ;;  %v471_v47 = vld [vmem:[%s1191_s19 + $0x80] sm:$0xff]  ;;  %s444_s28 = scalar_lea.vmem %s1269_s0, %s970_s25  ;;  %s451_s18 = scalar_lea.vmem %s1271_s2, %s970_s25 }
  0x2c   : > { %v1000_v45 = vpack.c.bf16 %v469_v44, %v467_v43  ;;  %v559_v57 = vld [vmem:[%s444_s28 + $0x8] sm:$0xff]  ;;  %v558_v59 = vld [vmem:[%s444_s28] sm:$0xff] }
  0x2d   : > { %v653_v63 = vld [vmem:[%s451_s18 + $0x8] sm:$0xff]  ;;  %v652_v0 = vld [vmem:[%s451_s18] sm:$0xff]  ;;  %s968_s18 = sshll.u32 %s394_s29, 5 }
  0x2e   : > { %993 = vmatpush1.bf16.msra.mxu0 %v992_v35  ;;  %v820_v3 = vld [vmem:[%s1278_s9] sm:$0xff]  ;;  %s439_s19 = scalar_lea.vmem [#allocation3], %s968_s18 }
  0x2f   : > { %995 = vmatprep.subr.bf16.mxu0 %v994_v36  ;;  %824 = vperm.xlu1 %1035, %v820_v3   ;;  %v648_v14 = vld [vmem:[%s1276_s7] sm:$0xff] }
  0x32   : > { %997 = vmatpush1.bf16.msra.mxu0 %v996_v41 }
  0x33   : > { %999 = vmatprep.subr.bf16.mxu0 %v998_v42  ;;  %829 = vperm.xlu1 %1035, %v821_v4  }
  0x36   : > { %1001 = vmatpush1.bf16.msra.mxu0 %v1000_v45 }
  0x37   : > { %499 = vmatprep.subr.mxu0 %v472_v46 }
  0x3a   : > { %500 = vmatpush1.msra.mxu0 %v471_v47 }
  0x3b   : > { %973 = vmatmul.mubr.msk.f32.vlgmr.msra.gmra.mrb[0].mxu0 %vm479_vm0, %v454_v48 }
  0xa2   : > { %v477_v49 = vpop.permute.xlu0 %476 }
  0xa6   : > { %v567_v5 = vpop.permute.xlu0 %566 }
  0xae   : > { %v825_v16 = vpop.permute.xlu1 %824 }
  0xb2   : > { %v830_v24 = vpop.permute.xlu1 %829 }
 0x10e   : > { %v549_v50 = vpop.f32.mrb[0].mxu0 }
 0x10f   : > { %v550_v51 = vadd.f32 %v549_v50, %v477_v49  ;;  %v551_v52 = vpop.f32.mrb[1].mxu0 }
 0x110   : > { %v552_v53 = vadd.f32 %v551_v52, %v477_v49 }
 0x111   : > { %v554_v54 = vmul.f32 0.1, %v550_v51 }
 0x112   : > { %v555_v55 = vmul.f32 0.1, %v552_v53 }
 0x113   : > { %v556_v56 = vmax.f32 %v550_v51, %v554_v54 }
 0x114   : > { %v557_v58 = vmax.f32 %v552_v53, %v555_v55 }
 0x115   : > { %v560_v61 = vadd.f32 %v558_v59, %v556_v56 }
 0x116   : > { %v561_v60 = vadd.f32 %v559_v57, %v557_v58 }
 0x118   : > { %573 = vmatprep.subr.mxu1 %v561_v60 }
 0x119   : > { %574 = vmatpush1.msra.mxu1 %v560_v61 }
 0x11a   : > { %974 = vmatmul.mubr.msk.f32.vlgmr.msra.gmra.mrb[0].mxu1 %vm569_vm1, %v562_v62  ;;  %660 = vmatprep.subr.mxu1 %v653_v63 }
 0x11b   : > { %724 = vmatprep.mubr.f32.mxu1 %v1060_v19  ;;  %661 = vmatpush1.msra.mxu1 %v652_v0 }
 0x11e   : > { %975 = vmatmul.mubr.msk.f32.vlgmr.msra.gmra.mrb[2].mxu1 %vm569_vm1, %v650_v1 }
 0x11f   : > { %730 = vmatprep.mubr.f32.mxu1 %v1060_v19 }
 0x122   : > { %976 = vmatmul.mubr.msk.f32.gmra.mrb[4].mxu1 %vm569_vm1, %v651_v2 }
 0x123   : > { %807 = vmatprep.mubr.f32.mxu1 %v1060_v19 }
 0x1ed   : > { %v639_v6 = vpop.f32.mrb[0].mxu1 }
 0x1ee   : > { %v640_v7 = vadd.f32 %v639_v6, %v567_v5  ;;  %v641_v8 = vpop.f32.mrb[1].mxu1 }
 0x1ef   : > { %v642_v9 = vadd.f32 %v641_v8, %v567_v5 }
 0x1f0   : > { %v644_v10 = vmul.f32 0.1, %v640_v7 }
 0x1f1   : > { %v645_v11 = vmul.f32 0.1, %v642_v9 }
 0x1f2   : > { %v646_v13 = vmax.f32 %v640_v7, %v644_v10 }
 0x1f3   : > { %v647_v12 = vmax.f32 %v642_v9, %v645_v11 }
 0x1f5   : > { %743 = vmatprep.subr.mxu1 %v647_v12 }
 0x1f6   : > { %744 = vmatpush1.msra.mxu1 %v646_v13 }
 0x1f7   : > { %977 = vmatmul.mubr.msk.f32.vlgmr.msra.gmra.mrb[2].mxu1 %vm569_vm1, %v648_v14 }
 0x1f8   : > { %813 = vmatprep.mubr.f32.mxu1 %v1060_v19 }
 0x1fb   : > { %978 = vmatmul.mubr.msk.f32.gmra.mrb[4].mxu1 %vm569_vm1, %v649_v15 }
 0x2ca   : > { %v809_v17 = vpop.f32.mrb[2].mxu1 }
 0x2cb   : > { %v832_v18 = vadd.f32 %v825_v16, %v809_v17  ;;  %v811_v20 = vpop.f32.mrb[3].mxu1 }
 0x2cc   : > { %v833_v21 = vadd.f32 %v825_v16, %v811_v20 }
 0x2cd   : > { %v836_v22 = vmul.f32 0.1, %v832_v18 }
 0x2ce   : > { %v837_v23 = vmul.f32 0.1, %v833_v21  ;;  %v815_v25 = vpop.f32.mrb[4].mxu1 }
 0x2cf   : > { %v840_v26 = vmax.f32 %v832_v18, %v836_v22  ;;  %v834_v27 = vadd.f32 %v830_v24, %v815_v25  ;;  %v817_v19 = vpop.f32.mrb[5].mxu1 }
 0x2d0   : > { %v841_v28 = vmax.f32 %v833_v21, %v837_v23  ;;  %v835_v29 = vadd.f32 %v830_v24, %v817_v19  ;;  %854 = sbr.rel (!%p1148_p5) target bundleno = 735 (0x2df), region = 87 }
 0x2d1   : > { %844 = vst [vmem:[%s439_s19] sm:$0xff] %v840_v26  ;;  %v838_v30 = vmul.f32 0.1, %v834_v27 }
 0x2d2   : > { %845 = vst [vmem:[%s439_s19 + $0x8] sm:$0xff] %v841_v28  ;;  %v839_v31 = vmul.f32 0.1, %v835_v29 }
 0x2d3   : > { %v842_v32 = vmax.f32 %v834_v27, %v838_v30 }
 0x2d4   : > { %v843_v33 = vmax.f32 %v835_v29, %v839_v31 }
 0x2d5   : > { %846 = vst [vmem:[%s439_s19 + $0x10] sm:$0xff] %v842_v32 }
 0x2d6   : > { %847 = vst [vmem:[%s439_s19 + $0x18] sm:$0xff] %v843_v33 }
 0x2d8   : > { %v870_v34 = vld [vmem:[%s439_s19] sm:$0xff] }
 0x2d9   : > { %v872_v35 = vld [vmem:[%s439_s19 + $0x8] sm:$0xff]  ;;  %871 = vst [vmem:[%s857_s23] sm:$0xff] %v870_v34 }
 0x2da   : > { %873 = vst [vmem:[%s857_s23 + $0x8] sm:$0xff] %v872_v35 }
 0x2dc   : > { %v874_v36 = vld [vmem:[%s439_s19 + $0x10] sm:$0xff] }
 0x2dd   : > { %v876_v37 = vld [vmem:[%s439_s19 + $0x18] sm:$0xff]  ;;  %875 = vst [vmem:[%s857_s23 + $0x20] sm:$0xff] %v874_v36 }
 0x2de   : > { %877 = vst [vmem:[%s857_s23 + $0x28] sm:$0xff] %v876_v37 }
 0x2df PF: > { %p17_p11 = scmp.ge.s32.totalorder %s1136_s17, 4   ;;  %s1281_s13 = smov %s1054_s14 }
 0x2e0   : > { %s1282_s14 = smov %s1146_s20  ;;  %s1283_s15 = smov %s1136_s17 }
 0x2e1   :  { %19 = sbr.rel (!%p17_p11) target bundleno = 2 (0x2), region = 147 }

</bundles_post_ra>
